<compile_context>
chip_gen: v6e
topology: v6e:2x2x1
jax: 0.10.0
libtpu: 0.0.40
codegen_flags: <defaults>
</compile_context>

<pallas_src>
import functools

import jax
import jax.numpy as jnp
from jax.experimental import pallas as pl
from jax.experimental.pallas import tpu as pltpu


def _cosface_kernel(logits_ref, labels_ref, out_ref, *, s, m, block_c):
    """One (block_b, block_c) tile of the CosFace forward."""
    logits = logits_ref[...]                       # (tb, tc)
    labels = labels_ref[...]                       # (tb, 1) int32 global class id
    # Global column (class) index of every lane in this tile.
    col0 = pl.program_id(1) * block_c
    col_ids = col0 + jax.lax.broadcasted_iota(jnp.int32, logits.shape, dimension=1)
    one_hot = col_ids == labels                    # (tb,1) broadcasts over lanes
    phi = logits - jnp.asarray(m, logits.dtype)
    out = jnp.where(one_hot, phi, logits) * jnp.asarray(s, logits.dtype)
    out_ref[...] = out.astype(out_ref.dtype)


def _pick_block(dim, target, align):
    """Largest `align`-multiple <= target, or the full dim if it is small.

    Returning the full dim when dim <= target (or dim < align) is always legal
    because a block equal to the full array extent satisfies the (8,128) rule.
    """
    if dim <= target or dim <= align:
        return dim
    return max(align, (min(target, dim) // align) * align)


def cosface_forward(logits, labels, *, s=64.0, m=0.4,
                    block_b=None, block_c=None, donate_logits=False):
    """CosFace forward. logits: (B, C) float, labels: (B,) int."""
    B, C = logits.shape
    labels2d = labels.reshape(B, 1).astype(jnp.int32)

    # ~2 MiB f32 per logits block by default; sweepable by the caller.
    if block_b is None:
        block_b = _pick_block(B, 512, 8)      # sublane-aligned
    if block_c is None:
        block_c = _pick_block(C, 1024, 128)   # lane-aligned -> unmasked vst

    grid = (pl.cdiv(B, block_b), pl.cdiv(C, block_c))
    kernel = functools.partial(_cosface_kernel, s=s, m=m, block_c=block_c)

    itemsize = jnp.dtype(logits.dtype).itemsize
    cost = pl.CostEstimate(
        flops=3 * B * C,                                   # sub, cmp/select, mul
        transcendentals=0,
        bytes_accessed=2 * B * C * itemsize + B * 4,       # read+write logits, labels
    )

    return pl.pallas_call(
        kernel,
        out_shape=jax.ShapeDtypeStruct((B, C), logits.dtype),
        grid_spec=pltpu.PrefetchScalarGridSpec(
            num_scalar_prefetch=0,
            grid=grid,
            in_specs=[
                pl.BlockSpec((block_b, block_c), lambda i, j: (i, j)),
                pl.BlockSpec((block_b, 1), lambda i, j: (i, 0)),
            ],
            out_specs=pl.BlockSpec((block_b, block_c), lambda i, j: (i, j)),
        ),
        compiler_params=pltpu.CompilerParams(
            dimension_semantics=("parallel", "parallel"),
        ),
        cost_estimate=cost,
        input_output_aliases=({0: 0} if donate_logits else {}),
    )(logits, labels2d)


def cosface_reference(logits, labels, *, s=64.0, m=0.4):
    one_hot = jax.nn.one_hot(labels, logits.shape[1], dtype=logits.dtype)
    phi = logits - m
    return jnp.where(one_hot == 1.0, phi, logits) * s


if __name__ == "__main__":
    key = jax.random.PRNGKey(0)

    # 1) Multi-block 2-D grid (exercises the program_id(1) column offset).
    B, C = 16, 256
    k_logits, k_labels = jax.random.split(jax.random.fold_in(key, 0))
    logits = jax.random.normal(k_logits, (B, C), dtype=jnp.float32)
    labels = jax.random.randint(k_labels, (B,), 0, C, dtype=jnp.int32)
    out = jax.block_until_ready(
        cosface_forward(logits, labels, s=64.0, m=0.4, block_b=8, block_c=128))
    ref = cosface_reference(logits, labels, s=64.0, m=0.4)
    assert out.shape == (B, C)
    assert jnp.allclose(out, ref, atol=1e-5, rtol=1e-5)

    # 2) Default block-selection path (small dims -> single full-extent block).
    out2 = jax.block_until_ready(cosface_forward(logits, labels, s=64.0, m=0.4))
    assert jnp.allclose(out2, ref, atol=1e-5, rtol=1e-5)

    # 3) Ragged batch edge (B % block_b != 0): relies on masked writeback of
    #    the final partial block.
    Br, Cr = 12, 384
    k_logits, k_labels = jax.random.split(jax.random.fold_in(key, 1))
    logits_r = jax.random.normal(k_logits, (Br, Cr), dtype=jnp.float32)
    labels_r = jax.random.randint(k_labels, (Br,), 0, Cr, dtype=jnp.int32)
    out_r = jax.block_until_ready(
        cosface_forward(logits_r, labels_r, s=64.0, m=0.4, block_b=8, block_c=128))
    ref_r = cosface_reference(logits_r, labels_r, s=64.0, m=0.4)
    assert jnp.allclose(out_r, ref_r, atol=1e-5, rtol=1e-5)

    print("KERNEL_OK")
</pallas_src>

<mosaic_0001>
module attributes {stable_mosaic.version = 11 : i64} {
  func.func @_cosface_kernel(%arg0: i32, %arg1: i32, %arg2: memref<8x128xf32, #tpu.memory_space<vmem>>, %arg3: memref<8x1xi32, #tpu.memory_space<vmem>>, %arg4: memref<8x128xf32, #tpu.memory_space<vmem>>) attributes {dimension_semantics = [#tpu.dimension_semantics<parallel>, #tpu.dimension_semantics<parallel>], iteration_bounds = array<i64: 2, 2>, scalar_prefetch = 0 : i64, scratch_operands = 0 : i64, tpu.core_type = #tpu.core_type<tc>, window_params = [{transform_indices = @transform_0, window_bounds = array<i64: 8, 128>}, {transform_indices = @transform_1, window_bounds = array<i64: 8, 1>}, {transform_indices = @transform_2, window_bounds = array<i64: 8, 128>}]} {
    %c0 = arith.constant 0 : index
    %c0_0 = arith.constant 0 : index
    %0 = vector.load %arg2[%c0, %c0_0] : memref<8x128xf32, #tpu.memory_space<vmem>>, vector<8x128xf32>
    %c0_1 = arith.constant 0 : index
    %c0_2 = arith.constant 0 : index
    %1 = vector.load %arg3[%c0_1, %c0_2] : memref<8x1xi32, #tpu.memory_space<vmem>>, vector<8x1xi32>
    %c128_i32 = arith.constant 128 : i32
    %2 = arith.muli %arg1, %c128_i32 : i32
    %3 = tpu.iota {dimensions = array<i32: 1>} : vector<8x128xi32>
    %4 = vector.broadcast %2 : i32 to vector<8x128xi32>
    %5 = arith.addi %4, %3 : vector<8x128xi32>
    %6 = vector.broadcast %1 : vector<8x1xi32> to vector<8x128xi32>
    %7 = arith.cmpi eq, %5, %6 : vector<8x128xi32>
    %cst = arith.constant 4.000000e-01 : f32
    %8 = vector.broadcast %cst : f32 to vector<8x128xf32>
    %9 = arith.subf %0, %8 : vector<8x128xf32>
    %10 = arith.select %7, %9, %0 : vector<8x128xi1>, vector<8x128xf32>
    %cst_3 = arith.constant 6.400000e+01 : f32
    %11 = vector.broadcast %cst_3 : f32 to vector<8x128xf32>
    %12 = arith.mulf %10, %11 : vector<8x128xf32>
    %c0_4 = arith.constant 0 : index
    %c0_5 = arith.constant 0 : index
    %13 = vector.load %arg4[%c0_4, %c0_5] : memref<8x128xf32, #tpu.memory_space<vmem>>, vector<8x128xf32>
    tpu.vector_store %arg4[%c0_4, %c0_5], %12 {strides = array<i32>} : memref<8x128xf32, #tpu.memory_space<vmem>>, vector<8x128xf32>,
    return
  }
  func.func @transform_0(%arg0: i32, %arg1: i32) -> (i32, i32) {
    %c0_i32 = arith.constant 0 : i32
    return %arg0, %arg1 : i32, i32
  }
  func.func @transform_1(%arg0: i32, %arg1: i32) -> (i32, i32) {
    %c0_i32 = arith.constant 0 : i32
    %c0_i32_0 = arith.constant 0 : i32
    return %arg0, %c0_i32 : i32, i32
  }
  func.func @transform_2(%arg0: i32, %arg1: i32) -> (i32, i32) {
    %c0_i32 = arith.constant 0 : i32
    return %arg0, %arg1 : i32, i32
  }
}

</mosaic_0001>

<bundles_post_ra>
// kernel: tpu_custom_call.1
= control target key start
LH: loop header
LB: loop body
LE: loop exit
PB: predicated region body
PF: predicated region fallthrough
CT: control target
= control target key end

     0   :  { %7 = vsyncpa [#allocation3], 0  ;;  %s726_s0 = inlined_call_operand.hbm [shape: f32[16,256], index: 0, kind: input, shape index: {}]   ;;  %s727_s1 = inlined_call_operand.vmem [shape: s32[16,1], index: 1, kind: input, shape index: {}]   ;;  %s728_s2 = inlined_call_operand.hbm [shape: f32[16,256], index: 2, kind: output, shape index: {}]  }
   0x1   :  { %9 = vsyncpa [#allocation3 + $0x1], 0 }
   0x2   :  { %10 = vsyncpa [#allocation4], 0 }
   0x3   :  { %12 = vsyncpa [#allocation4 + $0x1], 0  ;;  %s564_s9 = smov 0   ;;  %s566_s10 = smov 0  }
   0x4   :  { %s568_s11 = smov 0   ;;  %s570_s12 = smov 0  }
   0x5   :  { %s572_s13 = smov 0   ;;  %s574_s14 = smov 0  }
   0x6   :  { %s576_s15 = smov 0   ;;  %s578_s16 = smov 0  }
   0x7 LB: > { %s322_s17 = sadd.s32 4294967295, %s544_s16   ;;  %s323_s18 = sadd.s32 4294967294, %s544_s16   ;;  %s544_s16 = sphi %s578_s16, %s18_s16   ;;  %s540_s15 = sphi %s576_s15, %s741_s15   ;;  %s536_s14 = sphi %s574_s14, %s740_s14   ;;  %s532_s13 = sphi %s572_s13, %s739_s13   ;;  %s528_s12 = sphi %s570_s12, %s738_s12   ;;  %s524_s11 = sphi %s568_s11, %s737_s11   ;;  %s520_s10 = sphi %s566_s10, %s736_s10   ;;  %s516_s9 = sphi %s564_s9, %s735_s9  }
   0x8   : > { %s27_s19 = sadd.s32 1, %s536_s14  ;;  %s30_s20 = sadd.s32 1, %s540_s15 }
   0x9   : > { %p28_p0 = scmp.ge.s32.totalorder %s27_s19, 2  ;;  %s39_s21 = sadd.s32 1, %s524_s11 }
   0xa   : > { %p46_p1 = scmp.ne.s32.totalorder %s524_s11, %s520_s10  ;;  %p47_p2 = scmp.eq.s32.totalorder %s544_s16, 0 }
   0xb   : > { %s743_s19 = smov (%p28_p0, %s27_s19), 0  ;;  %s745_s20 = smov (!%p28_p0, %s30_s20), %s540_s15 }
   0xc   : > { %s35_s22 = ssub.s32 %s536_s14, %s743_s19  ;;  %p617_p3 = por %p47_p2, %p46_p1 }
   0xd   : > { %p32_p4 = scmp.ge.s32.totalorder %s745_s20, 2  ;;  %p52_p5 = scmp.ne.s32.totalorder %s520_s10, %s516_s9 }
   0xe   : > { %p53_p6 = scmp.eq.s32.totalorder %s322_s17, 0  ;;  %p104_p7 = scmp.eq.s32.totalorder %s322_s17, 3 }
   0xf   : > { %s747_s20 = smov (%p32_p4, %s745_s20), 0  ;;  %p110_p10 = scmp.eq.s32.totalorder %s323_s18, 3 }
  0x10   : > { %p625_p8 = por %p53_p6, %p52_p5  ;;  %p629_p9 = por %p104_p7, %p46_p1 }
  0x11   : > { %s34_s26 = ssub.s32 %s540_s15, %s747_s20  ;;  %p635_p12 = por %p110_p10, %p52_p5 }
  0x12   : > { %s36_s27 = sor.u32 %s35_s22, %s34_s26  ;;  %p352_p13 = scmp.lt.s32.totalorder %s544_s16, 4 }
  0x13   : > { %p37_p11 = scmp.eq.s32.totalorder %s36_s27, 0  ;;  %s130_s29 = sand.u32 1, %s524_s11  }
  0x14   : > { %s732_s28 = scalar_select %p635_p12, 1, 0 }
  0x15   : > { %s642_s30 = scalar_select %p37_p11, %s524_s11, %s39_s21  }
  0x16   : > { %s326_s3 = sshll.u32 %s130_s29, 3  ;;  %s327_s4 = sshll.u32 %s540_s15, 1 }
  0x17   : > { %s139_s5 = sadd.s32 %s536_s14, %s327_s4  ;;  %s134_s6 = scalar_lea.vmem [#allocation2], %s326_s3 }
  0x18   : > { %s143_s7 = sshll.u32 %s134_s6, 4  ;;  %s328_s8 = sshll.u32 %s139_s5, 7  ;;  %s144_s7 = int_to_ptr.vmem [resolvable:$true] %s143_s7 }
  0x19   : > { %s141_s22 = scalar_lea.hbm %s726_s0, %s328_s8  ;;  %p651_p0 = pnand %p352_p13, %p617_p3 }
  0x1a   : > { %p329_p1 = scmp.ge.s32.totalorder %s544_s16, 1  ;;  %p155_p2 = scmp.lt.s32.totalorder %s544_s16, 5 }
  0x1b   : > { %s131_s21 = scalar_lea.sflag [#allocation3], %s130_s29  ;;  %p422_p4 = pneg %p651_p0 }
  0x1c   : > { %s433_s27 = scalar_lea.vmem %s144_s7, 128  ;;  %s546_s3 = smov [#allocation2]  }
  0x1d   : > { %p434_p5 = scmp.ne.s32.totalorder %s144_s7, %s433_s27  ;;  %s438_s4 = sshll.u32 %s546_s3, 4  ;;  %s439_s4 = int_to_ptr.vmem [resolvable:$false] %s438_s4 }
  0x1e   : > { %s440_s5 = scalar_lea.vmem %s439_s4, 256  ;;  %p441_p10 = scmp.lt.s32.totalorder %s144_s7, %s439_s4 }
  0x1f   : > { %p436_p6 = pnand %p434_p5, %p422_p4  ;;  %p442_p11 = scmp.lt.s32.totalorder %s440_s5, %s433_s27 }
  0x21   : > { %p437_p7 = pneg %p436_p6  ;;  %p443_p3 = por %p442_p11, %p441_p10 }
  0x23   : > { %p444_p13 = pnand %p443_p3, %p437_p7 }
  0x25   : > { %447 = shalt.err (!%p444_p13)
}
  0x26   : > { %347 = dma.hbm_to_vmem [thread:$0]  (!%p651_p0), %s141_s22, 128, %s144_s7, %s131_s21  }
  0x27   : > { %p156_p12 = pnand %p329_p1, %p155_p2 }
  0x28   : > { %s666_s23 = sand.u32 (!%p156_p12), 1, %s520_s10  }
  0x29   : > { %159 = sbr.rel (%p156_p12) target bundleno = 195 (0xc3), region = 28  ;;  %s330_s29 = sshll.u32 (!%p156_p12), %s666_s23, 3 }
  0x2a   : > { %s162_s6 = scalar_lea.sflag (!%p156_p12), [#allocation3], %s666_s23  ;;  %s165_s8 = scalar_lea.vmem (!%p156_p12), [#allocation2], %s330_s29 }
  0x2e   : > { %507 = dma.done.wait (%p625_p8), %s162_s6, 128  }
  0x2f   : > { %509 = vsyncadd (%p625_p8), %s162_s6, 4294967168  ;;  %p190_p12 = scmp.lt.s32.totalorder %s532_s13, 1  ;;  %v547_v0 = vmov 0   ;;  %v197_v2 = vlaneseq  ;;  %s333_s21 = sshll.u32 %s528_s12, 7  ;;  %v194_v5 = vld [vmem:[%s165_s8] sm:$0xff] }
  0x30   : > { %419 = vset.pattern.permute.xlu0 %v547_v0  ;;  %v199_v4 = vstv %s333_s21  ;;  %s336_s24 = sshll.u32 %s532_s13, 1  ;;  %v334_v7 = vadd.f32 -0.4, %v194_v5  ;;  %s189_s4 = scalar_lea.vmem [#allocation5], %s330_s29 }
  0x31   : > { %s191_s7 = scalar_select %p190_p12, %s532_s13, 1  ;;  %v198_v3 = vand.u32 127, %v197_v2 }
  0x32   : > { %s221_s27 = sadd.s32 %s528_s12, %s336_s24  ;;  %s225_s5 = sshll.u32 %s189_s4, 4  ;;  %s226_s5 = int_to_ptr.vmem [resolvable:$true] %s225_s5 }
  0x33   : > { %s332_s17 = sshll.u32 %s191_s7, 3  ;;  %v200_v6 = vadd.s32 %v199_v4, %v198_v3  ;;  %s337_s3 = sshll.u32 %s221_s27, 7 }
  0x34   : > { %s193_s26 = scalar_lea.vmem %s727_s1, %s332_s17  ;;  %s223_s17 = scalar_lea.hbm %s728_s2, %s337_s3 }
  0x35   : > { %v195_v1 = vld [vmem:[%s193_s26] sm:$0xff]  ;;  %s210_s18 = scalar_lea.sflag [#allocation4], %s666_s23  ;;  %s448_s13 = scalar_lea.vmem %s226_s5, 128 }
  0x36   : > { %202 = vperm.xlu0 %419, %v195_v1   ;;  %p449_p8 = scmp.ne.s32.totalorder %s226_s5, %s448_s13  ;;  %s548_s12 = smov [#allocation5]  }
  0x37   : > { %s452_s8 = sshll.u32 %s548_s12, 4  ;;  %s453_s8 = int_to_ptr.vmem [resolvable:$false] %s452_s8 }
  0x38   : > { %p450_p0 = pnand %p449_p8, %p629_p9  ;;  %s454_s29 = scalar_lea.vmem %s453_s8, 256 }
  0x39   : > { %p455_p2 = scmp.lt.s32.totalorder %s226_s5, %s453_s8  ;;  %p456_p4 = scmp.lt.s32.totalorder %s454_s29, %s448_s13 }
  0x3a   : > { %p451_p1 = pneg %p450_p0 }
  0x3b   : > { %p457_p5 = por %p456_p4, %p455_p2 }
  0x3d   : > { %p458_p6 = pnand %p457_p5, %p451_p1 }
  0xb1   : > { %v203_v8 = vpop.permute.xlu0 %202 }
  0xb2   : > { %vm204_vm0 = vcmp.eq.s32.totalorder %v200_v6, %v203_v8 }
  0xb3   : > { %v206_v9 = vsel %vm204_vm0, %v334_v7, %v194_v5 }
  0xb4   : > { %v207_v10 = vmul.f32 64.0, %v206_v9 }
  0xb6   : > { %208 = vst [vmem:[%s189_s4] sm:$0xff] %v207_v10 }
  0xb7   : > { %461 = shalt.err (!%p458_p6)
}
  0xb8   : > { %s462_s22 = scalar_lea.hbm %s223_s17, 128  ;;  %s466_s21 = scalar_lea.hbm %s728_s2, 512 }
  0xb9   : > { %p463_p7 = scmp.ne.s32.totalorder %s223_s17, %s462_s22  ;;  %p467_p3 = scmp.lt.s32.totalorder %s223_s17, %s728_s2 }
  0xba   : > { %p468_p13 = scmp.lt.s32.totalorder %s466_s21, %s462_s22 }
  0xbb   : > { %p464_p10 = pnand %p463_p7, %p629_p9 }
  0xbc   : > { %p469_p12 = por %p468_p13, %p467_p3 }
  0xbd   : > { %p465_p11 = pneg %p464_p10 }
  0xbf   : > { %p470_p8 = pnand %p469_p12, %p465_p11 }
  0xc1   : > { %473 = shalt.err (!%p470_p8)
}
  0xc2   : > { %342 = dma.vmem_to_hbm [thread:$0]  (%p629_p9), %s226_s5, 128, %s223_s17, %s210_s18  }
  0xc3 PF: > { %p353_p0 = scmp.ge.s32.totalorder %s544_s16, 2  ;;  %s237_s3 = sand.u32 1, %s516_s9  }
  0xc4   : > { %p734_p1 = scmp.ne.s32.totalorder %s732_s28, 0  ;;  %s238_s4 = scalar_lea.sflag [#allocation4], %s237_s3 }
  0xc6   : > { %p349_p2 = pnand %p353_p0, %p734_p1 }
  0xc8   : > { %p350_p4 = pneg %p349_p2 }
  0xca   : > { %511 = dma.done.wait (%p350_p4), %s238_s4, 128  }
  0xcb   : > { %513 = vsyncadd (%p350_p4), %s238_s4, 4294967168  ;;  %s18_s16 = sadd.s32 1, %s544_s16   ;;  %s735_s9 = smov %s520_s10 }
  0xcc   : > { %p15_p5 = scmp.ge.s32.totalorder %s18_s16, 6   ;;  %s736_s10 = smov %s524_s11 }
  0xcd   : > { %s737_s11 = smov %s642_s30  ;;  %s738_s12 = smov %s536_s14 }
  0xce   : > { %s739_s13 = smov %s540_s15  ;;  %s740_s14 = smov %s743_s19 }
  0xcf   : > { %s741_s15 = smov %s747_s20  ;;  %17 = sbr.rel (!%p15_p5) target bundleno = 7 (0x7), region = 76 }
  0xd4   :  { %243 = vsyncpa [#allocation3], 1 }
  0xd5   :  { %245 = vsyncpa [#allocation3 + $0x1], 1 }
  0xd6   :  { %246 = vsyncpa [#allocation4], 1 }
  0xd7   :  { %248 = vsyncpa [#allocation4 + $0x1], 1 }

</bundles_post_ra>
